<compile_context>
chip_gen: v6e
topology: v6e:2x2x1
jax: 0.10.0
libtpu: 0.0.40
codegen_flags: <defaults>
</compile_context>

<pallas_src>
import jax
import jax.numpy as jnp
from jax import lax
from jax.experimental import pallas as pl
from jax.experimental.pallas import tpu as pltpu


LN_EPS = 1e-5                  # PyTorch nn.LayerNorm default
MATMUL_DTYPE = jnp.bfloat16    # MXU-native on v5e/v6e/v7x; LN / elementwise stay f32
_VMEM_LIMIT_BYTES = 48 * 1024 * 1024   # covers TB=2048..4096 tiles; < v7x 64 MiB physical


def _round_up(x, m):
    return ((x + m - 1) // m) * m


def _layernorm_relu(h, gamma, beta):
    # Two-pass stats in f32 (sum -> subtract mean -> sum of squared deviations):
    # matches torch.nn.LayerNorm (biased variance, eps inside rsqrt), no cancellation.
    n = h.shape[-1]
    mean = jnp.sum(h, axis=-1, keepdims=True) * (1.0 / n)
    d = h - mean
    var = jnp.sum(d * d, axis=-1, keepdims=True) * (1.0 / n)
    y = d * lax.rsqrt(var + LN_EPS) * gamma + beta
    return jnp.maximum(y, 0.0)


def soft_q_kernel(s_ref, a_ref, w1s_ref, w1a_ref, w2_ref, pk_ref, o_ref):
    # s_ref: (TB, S) f32   a_ref: (TB, A) f32
    # w1s_ref: (E, S, H) bf16   w1a_ref: (E, A, H) bf16   w2_ref: (E, H, H) bf16
    # pk_ref: (E, 8, H) f32  rows = [b1, g1, be1, b2, g2, be2, w3_row, b3]
    # o_ref : (E, 1, TB) f32 (lane-dense: batch along lanes)
    num_e = w1s_ref.shape[0]
    s = s_ref[...].astype(MATMUL_DTYPE)                    # activations cast once per tile
    a = a_ref[...].astype(MATMUL_DTYPE)

    for e in range(num_e):                                 # E is tiny (1-2); static unroll
        pk = pk_ref[e]                                     # (8, H) f32
        b1, g1, be1 = pk[0:1], pk[1:2], pk[2:3]
        b2, g2, be2 = pk[3:4], pk[4:5], pk[5:6]
        w3, b3 = pk[6:7], pk[7:8, 0:1]                     # (1, H), (1, 1)

        # Fused concat:  [s | a] @ W1  ==  s @ W1[:S] + a @ W1[S:]   (weights already bf16)
        h1 = (jnp.dot(s, w1s_ref[e], preferred_element_type=jnp.float32)
              + jnp.dot(a, w1a_ref[e], preferred_element_type=jnp.float32)
              + b1)
        h1 = _layernorm_relu(h1, g1, be1)                  # (TB, H) f32

        h2 = jnp.dot(h1.astype(MATMUL_DTYPE), w2_ref[e],
                     preferred_element_type=jnp.float32) + b2
        h2 = _layernorm_relu(h2, g2, be2)                  # (TB, H) f32

        # Scalar head, lane-dense:  q_row = W3 @ h2^T -> (1, TB)  (kept in f32).
        q_row = lax.dot_general(w3, h2,
                                dimension_numbers=(((1,), (1,)), ((), ())),
                                preferred_element_type=jnp.float32) + b3
        o_ref[e, :, :] = q_row.astype(o_ref.dtype)


def pack_kernel_params(params):
    """Turn one critic param dict (or a list of them) into kernel-ready arrays with a
    leading ensemble axis E: matmul weights pre-cast to bf16 once, and the eight small
    per-critic vectors packed into a single (E, 8, H) f32 block."""
    if isinstance(params, dict):
        params = [params]

    def one(p):
        hidden = p["w2"].shape[1]
        pk = jnp.concatenate([
            p["b1"], p["g1"], p["be1"],
            p["b2"], p["g2"], p["be2"],
            p["w3"],                                   # (1, H) head-weight row
            jnp.broadcast_to(p["b3"], (1, hidden)),    # scalar b3 (element [0] is used)
        ], axis=0).astype(jnp.float32)                 # (8, H)
        return {
            "w1s": p["w1s"].astype(MATMUL_DTYPE),
            "w1a": p["w1a"].astype(MATMUL_DTYPE),
            "w2": p["w2"].astype(MATMUL_DTYPE),
            "pk": pk,
        }

    packed = [one(p) for p in params]
    return jax.tree_util.tree_map(lambda *xs: jnp.stack(xs), *packed)


def soft_q_forward_ensemble(state, action, kparams, *, batch_tile=2048):
    """Evaluate E stacked critics in one launch.
    state: [B, S], action: [B, A]; kparams from pack_kernel_params.
    Returns q of shape [E, B, 1]."""
    B, S = state.shape
    _, A = action.shape
    E, _, H = kparams["w1s"].shape

    # Batch tiling: tile is always a multiple of 128 so the lane-dense (1, TB) output
    # stores are unmasked vst and the (TB, *) inputs stay sublane-aligned.
    if B <= batch_tile:
        tb = _round_up(max(B, 1), 128)
        b_pad = tb
    else:
        assert batch_tile % 128 == 0, "batch_tile must be a multiple of 128 when tiling"
        tb = batch_tile
        b_pad = _round_up(B, tb)

    if b_pad != B:
        state = jnp.pad(state, ((0, b_pad - B), (0, 0)))
        action = jnp.pad(action, ((0, b_pad - B), (0, 0)))
    n_tiles = b_pad // tb

    def data_spec(f):
        return pl.BlockSpec((tb, f), lambda i: (i, 0))

    def param_spec(shape):
        zeros = (0,) * len(shape)                     # constant index -> VMEM-resident
        return pl.BlockSpec(shape, lambda i: zeros)

    out = pl.pallas_call(
        soft_q_kernel,
        out_shape=jax.ShapeDtypeStruct((E, 1, b_pad), jnp.float32),
        grid=(n_tiles,),
        in_specs=[
            data_spec(S), data_spec(A),
            param_spec((E, S, H)),
            param_spec((E, A, H)),
            param_spec((E, H, H)),
            param_spec((E, 8, H)),
        ],
        out_specs=pl.BlockSpec((E, 1, tb), lambda i: (0, 0, i)),
        compiler_params=pltpu.CompilerParams(
            dimension_semantics=("parallel",),
            vmem_limit_bytes=_VMEM_LIMIT_BYTES),
    )(state, action, kparams["w1s"], kparams["w1a"], kparams["w2"], kparams["pk"])

    # (E, 1, B_pad) lane-dense  ->  (E, B, 1)
    return out[:, 0, :B][..., None]


def soft_q_forward(state, action, params, *, batch_tile=2048):
    """Single-critic forward matching SoftQNetwork.forward; returns [B, 1].
    `params` may be a natural f32 dict (init_params) or already kernel-packed."""
    kparams = params if (isinstance(params, dict) and "pk" in params) \
        else pack_kernel_params(params)
    return soft_q_forward_ensemble(state, action, kparams, batch_tile=batch_tile)[0]


def init_params(key, state_dim, action_dim, hidden_dim):
    """PyTorch-default init: U(+-1/sqrt(fan_in)) for Linear W and b; ones/zeros for LN.
    Weights stored [in, out] (kernel computes x @ W); W1 pre-split into state/action
    halves so the concat can stay fused inside the kernel."""
    d_in = state_dim + action_dim
    ks = jax.random.split(key, 6)

    def lin(kw, kb, fan_in, fan_out):
        bound = 1.0 / (fan_in ** 0.5)
        w = jax.random.uniform(kw, (fan_in, fan_out), jnp.float32, -bound, bound)
        b = jax.random.uniform(kb, (1, fan_out), jnp.float32, -bound, bound)
        return w, b

    w1, b1 = lin(ks[0], ks[1], d_in, hidden_dim)
    w2, b2 = lin(ks[2], ks[3], hidden_dim, hidden_dim)
    w3, b3 = lin(ks[4], ks[5], hidden_dim, 1)            # (H, 1), (1, 1)

    return {
        "w1s": w1[:state_dim], "w1a": w1[state_dim:], "b1": b1,
        "g1": jnp.ones((1, hidden_dim), jnp.float32),
        "be1": jnp.zeros((1, hidden_dim), jnp.float32),
        "w2": w2, "b2": b2,
        "g2": jnp.ones((1, hidden_dim), jnp.float32),
        "be2": jnp.zeros((1, hidden_dim), jnp.float32),
        "w3": w3.T,                                      # (1, H) row for the lane-dense head
        "b3": b3,
    }


# ---------------------------- plain-JAX reference ---------------------------------------

def _layernorm_ref(h, gamma, beta):
    mean = jnp.mean(h, axis=-1, keepdims=True)
    var = jnp.mean(jnp.square(h - mean), axis=-1, keepdims=True)
    return (h - mean) * lax.rsqrt(var + LN_EPS) * gamma + beta


def reference_forward(state, action, p, matmul_dtype=None):
    """PyTorch SoftQNetwork semantics; optionally with the same bf16 matmul-input cast
    the kernel applies (head always f32, like the kernel)."""
    def mm(a, b):
        if matmul_dtype is not None:
            a, b = a.astype(matmul_dtype), b.astype(matmul_dtype)
        return jnp.dot(a, b, preferred_element_type=jnp.float32,
                       precision=lax.Precision.HIGHEST)

    x = jnp.concatenate([state, action], axis=1)
    w1 = jnp.concatenate([p["w1s"], p["w1a"]], axis=0)
    h1 = jnp.maximum(_layernorm_ref(mm(x, w1) + p["b1"], p["g1"], p["be1"]), 0.0)
    h2 = jnp.maximum(_layernorm_ref(mm(h1, p["w2"]) + p["b2"], p["g2"], p["be2"]), 0.0)
    return jnp.dot(h2, p["w3"].T, preferred_element_type=jnp.float32,
                   precision=lax.Precision.HIGHEST) + p["b3"]


if __name__ == "__main__":
    # Small shapes consistent with the module: batch=8, state_dim=12, action_dim=4, hidden=32.
    B, STATE_DIM, ACTION_DIM, HIDDEN = 8, 12, 4, 32

    key = jax.random.PRNGKey(0)
    k_s, k_a, k_p1, k_p2, k_s2, k_a2 = jax.random.split(key, 6)

    state = jax.random.normal(k_s, (B, STATE_DIM), jnp.float32)
    action = jax.random.normal(k_a, (B, ACTION_DIM), jnp.float32)
    p1 = init_params(k_p1, STATE_DIM, ACTION_DIM, HIDDEN)

    # --- single critic (matches SoftQNetwork.forward) ---
    q = jax.block_until_ready(soft_q_forward(state, action, p1))
    assert q.shape == (B, 1)

    q_ref_mixed = reference_forward(state, action, p1, matmul_dtype=MATMUL_DTYPE)
    q_ref_f32 = reference_forward(state, action, p1, matmul_dtype=None)
    assert jnp.allclose(q, q_ref_mixed, atol=3e-3, rtol=3e-3), (q, q_ref_mixed)
    assert jnp.allclose(q, q_ref_f32, atol=5e-2), (q, q_ref_f32)   # bf16-matmul tolerance

    # --- both SAC critics (Q1/Q2) in one launch, bigger batch, exercising batch tiling ---
    B2 = 300
    state2 = jax.random.normal(k_s2, (B2, STATE_DIM), jnp.float32)
    action2 = jax.random.normal(k_a2, (B2, ACTION_DIM), jnp.float32)
    p2 = init_params(k_p2, STATE_DIM, ACTION_DIM, HIDDEN)

    kp = pack_kernel_params([p1, p2])            # pre-cast bf16 weights + packed (E,8,H)
    q_ens = jax.block_until_ready(
        soft_q_forward_ensemble(state2, action2, kp, batch_tile=128))
    assert q_ens.shape == (2, B2, 1)
    for e, p in enumerate((p1, p2)):
        r = reference_forward(state2, action2, p, matmul_dtype=MATMUL_DTYPE)
        assert jnp.allclose(q_ens[e], r, atol=3e-3, rtol=3e-3), (e, q_ens[e], r)

    print("KERNEL_OK")
</pallas_src>

<mosaic_0001>
module attributes {stable_mosaic.version = 11 : i64} {
  func.func @soft_q_kernel(%arg0: i32, %arg1: memref<128x12xf32, #tpu.memory_space<vmem>>, %arg2: memref<128x4xf32, #tpu.memory_space<vmem>>, %arg3: memref<1x12x32xbf16, #tpu.memory_space<vmem>>, %arg4: memref<1x4x32xbf16, #tpu.memory_space<vmem>>, %arg5: memref<1x32x32xbf16, #tpu.memory_space<vmem>>, %arg6: memref<1x8x32xf32, #tpu.memory_space<vmem>>, %arg7: memref<1x1x128xf32, #tpu.memory_space<vmem>>) attributes {dimension_semantics = [#tpu.dimension_semantics<parallel>], iteration_bounds = array<i64: 1>, scalar_prefetch = 0 : i64, scratch_operands = 0 : i64, tpu.core_type = #tpu.core_type<tc>, window_params = [{transform_indices = @transform_0, window_bounds = array<i64: 128, 12>}, {transform_indices = @transform_1, window_bounds = array<i64: 128, 4>}, {pipeline_mode = #tpu.pipeline_mode<synchronous>, transform_indices = @transform_2, window_bounds = array<i64: 1, 12, 32>}, {pipeline_mode = #tpu.pipeline_mode<synchronous>, transform_indices = @transform_3, window_bounds = array<i64: 1, 4, 32>}, {pipeline_mode = #tpu.pipeline_mode<synchronous>, transform_indices = @transform_4, window_bounds = array<i64: 1, 32, 32>}, {pipeline_mode = #tpu.pipeline_mode<synchronous>, transform_indices = @transform_5, window_bounds = array<i64: 1, 8, 32>}, {transform_indices = @transform_6, window_bounds = array<i64: 1, 1, 128>}]} {
    %c0 = arith.constant 0 : index
    %c0_0 = arith.constant 0 : index
    %0 = vector.load %arg1[%c0, %c0_0] : memref<128x12xf32, #tpu.memory_space<vmem>>, vector<128x12xf32>
    %1 = arith.truncf %0 : vector<128x12xf32> to vector<128x12xbf16>
    %c0_1 = arith.constant 0 : index
    %c0_2 = arith.constant 0 : index
    %2 = vector.load %arg2[%c0_1, %c0_2] : memref<128x4xf32, #tpu.memory_space<vmem>>, vector<128x4xf32>
    %3 = arith.truncf %2 : vector<128x4xf32> to vector<128x4xbf16>
    %c0_3 = arith.constant 0 : index
    %c0_4 = arith.constant 0 : index
    %c0_5 = arith.constant 0 : index
    %4 = vector.load %arg6[%c0_3, %c0_4, %c0_5] : memref<1x8x32xf32, #tpu.memory_space<vmem>>, vector<1x8x32xf32>
    %5 = vector.shape_cast %4 : vector<1x8x32xf32> to vector<8x32xf32>
    %6 = vector.extract_strided_slice %5 {offsets = [0, 0], sizes = [1, 32], strides = [1, 1]} : vector<8x32xf32> to vector<1x32xf32>
    %7 = vector.extract_strided_slice %5 {offsets = [1, 0], sizes = [1, 32], strides = [1, 1]} : vector<8x32xf32> to vector<1x32xf32>
    %8 = vector.extract_strided_slice %5 {offsets = [2, 0], sizes = [1, 32], strides = [1, 1]} : vector<8x32xf32> to vector<1x32xf32>
    %9 = vector.extract_strided_slice %5 {offsets = [3, 0], sizes = [1, 32], strides = [1, 1]} : vector<8x32xf32> to vector<1x32xf32>
    %10 = vector.extract_strided_slice %5 {offsets = [4, 0], sizes = [1, 32], strides = [1, 1]} : vector<8x32xf32> to vector<1x32xf32>
    %11 = vector.extract_strided_slice %5 {offsets = [5, 0], sizes = [1, 32], strides = [1, 1]} : vector<8x32xf32> to vector<1x32xf32>
    %12 = vector.extract_strided_slice %5 {offsets = [6, 0], sizes = [1, 32], strides = [1, 1]} : vector<8x32xf32> to vector<1x32xf32>
    %13 = vector.extract_strided_slice %5 {offsets = [7, 0], sizes = [1, 1], strides = [1, 1]} : vector<8x32xf32> to vector<1x1xf32>
    %c0_6 = arith.constant 0 : index
    %c0_7 = arith.constant 0 : index
    %c0_8 = arith.constant 0 : index
    %14 = vector.load %arg3[%c0_6, %c0_7, %c0_8] : memref<1x12x32xbf16, #tpu.memory_space<vmem>>, vector<1x12x32xbf16>
    %15 = vector.shape_cast %14 : vector<1x12x32xbf16> to vector<12x32xbf16>
    %cst = arith.constant dense<0.000000e+00> : vector<128x32xf32>
    %16 = tpu.matmul %1, %15, %cst {dimension_numbers = #tpu.dot_dimension_numbers<[1], [0], [0], [1], [0, 0, 1, 1], [], []>} : vector<128x12xbf16>, vector<12x32xbf16>, vector<128x32xf32> -> vector<128x32xf32>
    %c0_9 = arith.constant 0 : index
    %c0_10 = arith.constant 0 : index
    %c0_11 = arith.constant 0 : index
    %17 = vector.load %arg4[%c0_9, %c0_10, %c0_11] : memref<1x4x32xbf16, #tpu.memory_space<vmem>>, vector<1x4x32xbf16>
    %18 = vector.shape_cast %17 : vector<1x4x32xbf16> to vector<4x32xbf16>
    %cst_12 = arith.constant dense<0.000000e+00> : vector<128x32xf32>
    %19 = tpu.matmul %3, %18, %cst_12 {dimension_numbers = #tpu.dot_dimension_numbers<[1], [0], [0], [1], [0, 0, 1, 1], [], []>} : vector<128x4xbf16>, vector<4x32xbf16>, vector<128x32xf32> -> vector<128x32xf32>
    %20 = arith.addf %16, %19 : vector<128x32xf32>
    %21 = vector.broadcast %6 : vector<1x32xf32> to vector<128x32xf32>
    %22 = arith.addf %20, %21 : vector<128x32xf32>
    %cst_13 = arith.constant dense<0.000000e+00> : vector<128xf32>
    %23 = vector.multi_reduction <add>, %22, %cst_13 [1] : vector<128x32xf32> to vector<128xf32>
    %24 = vector.shape_cast %23 : vector<128xf32> to vector<128x1xf32>
    %cst_14 = arith.constant 3.125000e-02 : f32
    %25 = vector.broadcast %cst_14 : f32 to vector<128x1xf32>
    %26 = arith.mulf %24, %25 : vector<128x1xf32>
    %27 = vector.broadcast %26 : vector<128x1xf32> to vector<128x32xf32>
    %28 = arith.subf %22, %27 : vector<128x32xf32>
    %29 = arith.mulf %28, %28 : vector<128x32xf32>
    %cst_15 = arith.constant dense<0.000000e+00> : vector<128xf32>
    %30 = vector.multi_reduction <add>, %29, %cst_15 [1] : vector<128x32xf32> to vector<128xf32>
    %31 = vector.shape_cast %30 : vector<128xf32> to vector<128x1xf32>
    %cst_16 = arith.constant 3.125000e-02 : f32
    %32 = vector.broadcast %cst_16 : f32 to vector<128x1xf32>
    %33 = arith.mulf %31, %32 : vector<128x1xf32>
    %cst_17 = arith.constant 9.99999974E-6 : f32
    %34 = vector.broadcast %cst_17 : f32 to vector<128x1xf32>
    %35 = arith.addf %33, %34 : vector<128x1xf32>
    %36 = math.rsqrt %35 : vector<128x1xf32>
    %37 = vector.broadcast %36 : vector<128x1xf32> to vector<128x32xf32>
    %38 = arith.mulf %28, %37 : vector<128x32xf32>
    %39 = vector.broadcast %7 : vector<1x32xf32> to vector<128x32xf32>
    %40 = arith.mulf %38, %39 : vector<128x32xf32>
    %41 = vector.broadcast %8 : vector<1x32xf32> to vector<128x32xf32>
    %42 = arith.addf %40, %41 : vector<128x32xf32>
    %cst_18 = arith.constant 0.000000e+00 : f32
    %43 = vector.broadcast %cst_18 : f32 to vector<128x32xf32>
    %44 = arith.maximumf %42, %43 : vector<128x32xf32>
    %45 = arith.truncf %44 : vector<128x32xf32> to vector<128x32xbf16>
    %c0_19 = arith.constant 0 : index
    %c0_20 = arith.constant 0 : index
    %c0_21 = arith.constant 0 : index
    %46 = vector.load %arg5[%c0_19, %c0_20, %c0_21] : memref<1x32x32xbf16, #tpu.memory_space<vmem>>, vector<1x32x32xbf16>
    %47 = vector.shape_cast %46 : vector<1x32x32xbf16> to vector<32x32xbf16>
    %cst_22 = arith.constant dense<0.000000e+00> : vector<128x32xf32>
    %48 = tpu.matmul %45, %47, %cst_22 {dimension_numbers = #tpu.dot_dimension_numbers<[1], [0], [0], [1], [0, 0, 1, 1], [], []>} : vector<128x32xbf16>, vector<32x32xbf16>, vector<128x32xf32> -> vector<128x32xf32>
    %49 = vector.broadcast %9 : vector<1x32xf32> to vector<128x32xf32>
    %50 = arith.addf %48, %49 : vector<128x32xf32>
    %cst_23 = arith.constant dense<0.000000e+00> : vector<128xf32>
    %51 = vector.multi_reduction <add>, %50, %cst_23 [1] : vector<128x32xf32> to vector<128xf32>
    %52 = vector.shape_cast %51 : vector<128xf32> to vector<128x1xf32>
    %cst_24 = arith.constant 3.125000e-02 : f32
    %53 = vector.broadcast %cst_24 : f32 to vector<128x1xf32>
    %54 = arith.mulf %52, %53 : vector<128x1xf32>
    %55 = vector.broadcast %54 : vector<128x1xf32> to vector<128x32xf32>
    %56 = arith.subf %50, %55 : vector<128x32xf32>
    %57 = arith.mulf %56, %56 : vector<128x32xf32>
    %cst_25 = arith.constant dense<0.000000e+00> : vector<128xf32>
    %58 = vector.multi_reduction <add>, %57, %cst_25 [1] : vector<128x32xf32> to vector<128xf32>
    %59 = vector.shape_cast %58 : vector<128xf32> to vector<128x1xf32>
    %cst_26 = arith.constant 3.125000e-02 : f32
    %60 = vector.broadcast %cst_26 : f32 to vector<128x1xf32>
    %61 = arith.mulf %59, %60 : vector<128x1xf32>
    %cst_27 = arith.constant 9.99999974E-6 : f32
    %62 = vector.broadcast %cst_27 : f32 to vector<128x1xf32>
    %63 = arith.addf %61, %62 : vector<128x1xf32>
    %64 = math.rsqrt %63 : vector<128x1xf32>
    %65 = vector.broadcast %64 : vector<128x1xf32> to vector<128x32xf32>
    %66 = arith.mulf %56, %65 : vector<128x32xf32>
    %67 = vector.broadcast %10 : vector<1x32xf32> to vector<128x32xf32>
    %68 = arith.mulf %66, %67 : vector<128x32xf32>
    %69 = vector.broadcast %11 : vector<1x32xf32> to vector<128x32xf32>
    %70 = arith.addf %68, %69 : vector<128x32xf32>
    %cst_28 = arith.constant 0.000000e+00 : f32
    %71 = vector.broadcast %cst_28 : f32 to vector<128x32xf32>
    %72 = arith.maximumf %70, %71 : vector<128x32xf32>
    %cst_29 = arith.constant dense<0.000000e+00> : vector<1x128xf32>
    %73 = tpu.matmul %12, %72, %cst_29 {dimension_numbers = #tpu.dot_dimension_numbers<[1], [1], [0], [0], [0, 0, 1, 0], [], []>} : vector<1x32xf32>, vector<128x32xf32>, vector<1x128xf32> -> vector<1x128xf32>
    %74 = vector.broadcast %13 : vector<1x1xf32> to vector<1x128xf32>
    %75 = arith.addf %73, %74 : vector<1x128xf32>
    %c0_30 = arith.constant 0 : index
    %c0_31 = arith.constant 0 : index
    %c0_32 = arith.constant 0 : index
    %76 = vector.load %arg7[%c0_30, %c0_31, %c0_32] : memref<1x1x128xf32, #tpu.memory_space<vmem>>, vector<1x1x128xf32>
    %77 = vector.shape_cast %76 : vector<1x1x128xf32> to vector<1x128xf32>
    %78 = vector.shape_cast %75 : vector<1x128xf32> to vector<1x1x128xf32>
    tpu.vector_store %arg7[%c0_30, %c0_31, %c0_32], %78 {strides = array<i32>} : memref<1x1x128xf32, #tpu.memory_space<vmem>>, vector<1x1x128xf32>,
    return
  }
  func.func @transform_0(%arg0: i32) -> (i32, i32) {
    %c0_i32 = arith.constant 0 : i32
    %c0_i32_0 = arith.constant 0 : i32
    return %arg0, %c0_i32 : i32, i32
  }
  func.func @transform_1(%arg0: i32) -> (i32, i32) {
    %c0_i32 = arith.constant 0 : i32
    %c0_i32_0 = arith.constant 0 : i32
    return %arg0, %c0_i32 : i32, i32
  }
  func.func @transform_2(%arg0: i32) -> (i32, i32, i32) {
    %c0_i32 = arith.constant 0 : i32
    %c0_i32_0 = arith.constant 0 : i32
    %c0_i32_1 = arith.constant 0 : i32
    %c0_i32_2 = arith.constant 0 : i32
    return %c0_i32, %c0_i32_0, %c0_i32_1 : i32, i32, i32
  }
  func.func @transform_3(%arg0: i32) -> (i32, i32, i32) {
    %c0_i32 = arith.constant 0 : i32
    %c0_i32_0 = arith.constant 0 : i32
    %c0_i32_1 = arith.constant 0 : i32
    %c0_i32_2 = arith.constant 0 : i32
    return %c0_i32, %c0_i32_0, %c0_i32_1 : i32, i32, i32
  }
  func.func @transform_4(%arg0: i32) -> (i32, i32, i32) {
    %c0_i32 = arith.constant 0 : i32
    %c0_i32_0 = arith.constant 0 : i32
    %c0_i32_1 = arith.constant 0 : i32
    %c0_i32_2 = arith.constant 0 : i32
    return %c0_i32, %c0_i32_0, %c0_i32_1 : i32, i32, i32
  }
  func.func @transform_5(%arg0: i32) -> (i32, i32, i32) {
    %c0_i32 = arith.constant 0 : i32
    %c0_i32_0 = arith.constant 0 : i32
    %c0_i32_1 = arith.constant 0 : i32
    %c0_i32_2 = arith.constant 0 : i32
    return %c0_i32, %c0_i32_0, %c0_i32_1 : i32, i32, i32
  }
  func.func @transform_6(%arg0: i32) -> (i32, i32, i32) {
    %c0_i32 = arith.constant 0 : i32
    %c0_i32_0 = arith.constant 0 : i32
    %c0_i32_1 = arith.constant 0 : i32
    return %c0_i32, %c0_i32_0, %arg0 : i32, i32, i32
  }
}

</mosaic_0001>

<bundles_post_ra>
// kernel: tpu_custom_call.1
= control target key start
LH: loop header
LB: loop body
LE: loop exit
PB: predicated region body
PF: predicated region fallthrough
CT: control target
= control target key end

     0   :  { %vm102_vm0 = vcmask 1041408   ;;  %vm233_vm1 = vcmask 1045504   ;;  %vm77_vm2 = vcmask 31744   ;;  %vm208_vm3 = vcmask 97280   ;;  %s2107_s0 = inlined_call_operand.vmem [shape: f32[128,12], index: 0, kind: input, shape index: {}]   ;;  %s2108_s1 = inlined_call_operand.vmem [shape: f32[128,4], index: 1, kind: input, shape index: {}]   ;;  %s2109_s2 = inlined_call_operand.vmem [shape: bf16[1,12,32], index: 2, kind: input, shape index: {}]   ;;  %s2110_s3 = inlined_call_operand.vmem [shape: bf16[1,4,32], index: 3, kind: input, shape index: {}]   ;;  %s2111_s4 = inlined_call_operand.vmem [shape: bf16[1,32,32], index: 4, kind: input, shape index: {}]   ;;  %s2112_s5 = inlined_call_operand.vmem [shape: f32[1,8,32], index: 5, kind: input, shape index: {}]   ;;  %s2113_s6 = inlined_call_operand.hbm [shape: f32[1,1,128], index: 6, kind: output, shape index: {}]  }
   0x1   :  { %v76_v0 = vld [vmem:[%s2110_s3] sm:$0x3]  ;;  %v50_v4 = vld [vmem:[%s2108_s1 + $0x8] sm:$0xff]  ;;  %v51_v5 = vld [vmem:[%s2108_s1 + $0x10] sm:$0xff] }
   0x2   :  { %1354 = vmatprep.subr.msk.bf16.mxu0 %vm102_vm0, %v76_v0  ;;  %v104_v1 = vsel %vm102_vm0, %v76_v0, 0  ;;  %v1361_v2 = vld [vmem:[%s2109_s2] sm:$0x3f]   ;;  %v52_v6 = vld [vmem:[%s2108_s1 + $0x18] sm:$0xff]  ;;  %v26_v11 = vld [vmem:[%s2107_s0 + $0x8] sm:$0xff] }
   0x3   :  { %v49_v3 = vld [vmem:[%s2108_s1] sm:$0xff]  ;;  %1264 = vmatpush3.bf16.msra.mxu0 %v104_v1  ;;  %1355 = vmatprep.subr.msk.bf16.mxu1 %vm233_vm1, %v1361_v2  ;;  %v235_v8 = vsel %vm233_vm1, %v1361_v2, 0  ;;  %v66_v9 = vpack.c.bf16 %v52_v6, %v51_v5  ;;  %v27_v12 = vld [vmem:[%s2107_s0 + $0x10] sm:$0xff]  ;;  %v28_v14 = vld [vmem:[%s2107_s0 + $0x18] sm:$0xff] }
   0x4   :  { %v65_v7 = vpack.c.bf16 %v50_v4, %v49_v3  ;;  %v25_v10 = vld [vmem:[%s2107_s0] sm:$0xff]  ;;  %1282 = vmatpush3.bf16.msra.mxu1 %v235_v8  ;;  %v54_v16 = vld [vmem:[%s2108_s1 + $0x28] sm:$0xff]  ;;  %v42_v17 = vpack.c.bf16 %v28_v14, %v27_v12  ;;  %v55_v21 = vld [vmem:[%s2108_s1 + $0x30] sm:$0xff] }
   0x5   :  { %v41_v13 = vpack.c.bf16 %v26_v11, %v25_v10  ;;  %v53_v15 = vld [vmem:[%s2108_s1 + $0x20] sm:$0xff]  ;;  %v30_v20 = vld [vmem:[%s2107_s0 + $0x28] sm:$0xff]  ;;  %v56_v22 = vld [vmem:[%s2108_s1 + $0x38] sm:$0xff] }
   0x6   :  { %1265 = vmatprep.mubr.msk.bf16.mxu0 %vm77_vm2, %v65_v7  ;;  %v67_v18 = vpack.c.bf16 %v54_v16, %v53_v15  ;;  %v29_v19 = vld [vmem:[%s2107_s0 + $0x20] sm:$0xff]  ;;  %v31_v24 = vld [vmem:[%s2107_s0 + $0x30] sm:$0xff]  ;;  %v32_v25 = vld [vmem:[%s2107_s0 + $0x38] sm:$0xff]  ;;  %v68_v30 = vpack.c.bf16 %v56_v22, %v55_v21 }
   0x7   :  { %1266 = vmatmul.mubr.msk.bf16.vlgmr.msra.gmra.mxu0 %vm77_vm2, %v66_v9  ;;  %1283 = vmatprep.mubr.msk.bf16.mxu1 %vm208_vm3, %v41_v13  ;;  %v43_v23 = vpack.c.bf16 %v30_v20, %v29_v19  ;;  %v57_v26 = vld [vmem:[%s2108_s1 + $0x40] sm:$0xff]  ;;  %v58_v27 = vld [vmem:[%s2108_s1 + $0x48] sm:$0xff]  ;;  %v44_v31 = vpack.c.bf16 %v32_v25, %v31_v24 }
   0x8   :  { %1284 = vmatmul.mubr.msk.bf16.vlgmr.msra.gmra.mxu1 %vm208_vm3, %v42_v17  ;;  %1269 = vmatprep.mubr.msk.bf16.mxu0 %vm77_vm2, %v67_v18  ;;  %v33_v28 = vld [vmem:[%s2107_s0 + $0x40] sm:$0xff]  ;;  %v34_v29 = vld [vmem:[%s2107_s0 + $0x48] sm:$0xff]  ;;  %v69_v32 = vpack.c.bf16 %v58_v27, %v57_v26 }
   0x9   :  { %1287 = vmatprep.mubr.msk.bf16.mxu1 %vm208_vm3, %v43_v23  ;;  %v45_v33 = vpack.c.bf16 %v34_v29, %v33_v28 }
   0xa   :  { %11 = vsyncpa [#allocation3], 0  ;;  %v59_v34 = vld [vmem:[%s2108_s1 + $0x50] sm:$0xff]  ;;  %v60_v35 = vld [vmem:[%s2108_s1 + $0x58] sm:$0xff]  ;;  %v334_v52 = vlaneseq  ;;  %vm354_vm4 = vcmask 261120   ;;  %vm1452_vm5 = vmmov 0  }
   0xb   :  { %v35_v36 = vld [vmem:[%s2107_s0 + $0x50] sm:$0xff]  ;;  %v36_v37 = vld [vmem:[%s2107_s0 + $0x58] sm:$0xff]  ;;  %v61_v38 = vld [vmem:[%s2108_s1 + $0x60] sm:$0xff]  ;;  %v70_v42 = vpack.c.bf16 %v60_v35, %v59_v34 }
   0xc   :  { %v62_v39 = vld [vmem:[%s2108_s1 + $0x68] sm:$0xff]  ;;  %v37_v40 = vld [vmem:[%s2107_s0 + $0x60] sm:$0xff]  ;;  %v46_v43 = vpack.c.bf16 %v36_v37, %v35_v36  ;;  %v63_v46 = vld [vmem:[%s2108_s1 + $0x70] sm:$0xff]  ;;  %v1608_v53 = vshrl.u32 %v334_v52, 7 }
   0xd   :  { %v38_v41 = vld [vmem:[%s2107_s0 + $0x68] sm:$0xff]  ;;  %v71_v44 = vpack.c.bf16 %v62_v39, %v61_v38  ;;  %v64_v47 = vld [vmem:[%s2108_s1 + $0x78] sm:$0xff]  ;;  %v39_v48 = vld [vmem:[%s2107_s0 + $0x70] sm:$0xff] }
   0xe   :  { %v47_v45 = vpack.c.bf16 %v38_v41, %v37_v40  ;;  %v40_v49 = vld [vmem:[%s2107_s0 + $0x78] sm:$0xff]  ;;  %v72_v50 = vpack.c.bf16 %v64_v47, %v63_v46  ;;  %v336_v54 = vsub.s32 0, %v1608_v53  ;;  %v1614_v55 = vld [vmem:[%s2112_s5] sm:$0xff] }
   0xf   :  { %1270 = vmatmul.mubr.msk.bf16.gmra.mxu0 %vm77_vm2, %v68_v30  ;;  %v48_v51 = vpack.c.bf16 %v40_v49, %v39_v48 }
  0x10   :  { %1288 = vmatmul.mubr.msk.bf16.gmra.mxu1 %vm208_vm3, %v44_v31  ;;  %1273 = vmatprep.mubr.msk.bf16.mxu0 %vm77_vm2, %v69_v32  ;;  %v1617_v57 = vrot.slane %v1614_v55, %v336_v54 }
  0x11   :  { %1291 = vmatprep.mubr.msk.bf16.mxu1 %vm208_vm3, %v45_v33 }
  0x17   :  { %1274 = vmatmul.mubr.msk.bf16.gmra.mxu0 %vm77_vm2, %v70_v42 }
  0x18   :  { %1292 = vmatmul.mubr.msk.bf16.gmra.mxu1 %vm208_vm3, %v46_v43  ;;  %1277 = vmatprep.mubr.msk.bf16.mxu0 %vm77_vm2, %v71_v44 }
  0x19   :  { %1295 = vmatprep.mubr.msk.bf16.mxu1 %vm208_vm3, %v47_v45 }
  0x1f   :  { %1278 = vmatmul.mubr.msk.bf16.gmra.mxu0 %vm77_vm2, %v72_v50 }
  0x20   :  { %1296 = vmatmul.mubr.msk.bf16.gmra.mxu1 %vm208_vm3, %v48_v51 }
  0xc7   :  { %v1267_v56 = vpop.f32.mrf.mxu0 }
  0xc8   :  { %v1285_v58 = vpop.f32.mrf.mxu1 }
  0xc9   :  { %v140_v59 = vpop.f32.mrf.mxu0  ;;  %v280_v60 = vadd.f32 %v1285_v58, %v1267_v56 }
  0xca   :  { %v271_v61 = vpop.f32.mrf.mxu1 }
  0xcb   :  { %v1268_v62 = vpop.f32.mrf.mxu0  ;;  %v272_v63 = vadd.f32 %v271_v61, %v140_v59  ;;  %v1620_v0 = vadd.f32 %v1617_v57, %v280_v60 }
  0xcc   :  { %v1286_v1 = vpop.f32.mrf.mxu1 }
  0xcd   :  { %v143_v2 = vpop.f32.mrf.mxu0  ;;  %v283_v3 = vadd.f32 %v1286_v1, %v1268_v62  ;;  %v361_v4 = vsel %vm354_vm4, %v1620_v0, 0.0  ;;  %v1625_v5 = vadd.f32 %v1617_v57, %v272_v63 }
  0xce   :  { %362 = vadd.xlane.f32.xlu1 %v361_v4  ;;  %v274_v6 = vpop.f32.mrf.mxu1 }
  0xcf   :  { %v1271_v7 = vpop.f32.mrf.mxu0  ;;  %v275_v8 = vadd.f32 %v274_v6, %v143_v2  ;;  %v355_v9 = vsel %vm354_vm4, %v1625_v5, 0.0  ;;  %v1630_v10 = vadd.f32 %v1617_v57, %v283_v3 }
  0xd0   :  { %v1289_v11 = vpop.f32.mrf.mxu1  ;;  %356 = vadd.xlane.f32.xlu0 %v355_v9 }
  0xd1   :  { %v156_v12 = vpop.f32.mrf.mxu0  ;;  %v364_v13 = vsel %vm354_vm4, %v1630_v10, 0.0  ;;  %v1635_v14 = vadd.f32 %v1617_v57, %v275_v8  ;;  %v296_v15 = vadd.f32 %v1289_v11, %v1271_v7 }
  0xd2   :  { %365 = vadd.xlane.f32.xlu1 %v364_v13  ;;  %v287_v16 = vpop.f32.mrf.mxu1 }
  0xd3   :  { %v1272_v17 = vpop.f32.mrf.mxu0  ;;  %v288_v18 = vadd.f32 %v287_v16, %v156_v12  ;;  %v358_v19 = vsel %vm354_vm4, %v1635_v14, 0.0  ;;  %v1643_v24 = vadd.f32 %v1617_v57, %v296_v15 }
  0xd4   :  { %v1290_v20 = vpop.f32.mrf.mxu1  ;;  %359 = vadd.xlane.f32.xlu0 %v358_v19 }
  0xd5   :  { %v159_v21 = vpop.f32.mrf.mxu0  ;;  %v1640_v22 = vadd.f32 %v1617_v57, %v288_v18  ;;  %v299_v25 = vadd.f32 %v1290_v20, %v1272_v17  ;;  %v373_v33 = vsel %vm354_vm4, %v1643_v24, 0.0 }
  0xd6   :  { %v290_v23 = vpop.f32.mrf.mxu1 }
  0xd7   :  { %v1275_v26 = vpop.f32.mrf.mxu0  ;;  %v291_v27 = vadd.f32 %v290_v23, %v159_v21  ;;  %v367_v28 = vsel %vm354_vm4, %v1640_v22, 0.0  ;;  %v1655_v38 = vadd.f32 %v1617_v57, %v299_v25 }
  0xd8   :  { %v1293_v29 = vpop.f32.mrf.mxu1  ;;  %368 = vadd.xlane.f32.xlu0 %v367_v28 }
  0xd9   :  { %v172_v30 = vpop.f32.mrf.mxu0  ;;  %v1648_v31 = vadd.f32 %v1617_v57, %v291_v27  ;;  %v312_v34 = vadd.f32 %v1293_v29, %v1275_v26  ;;  %v376_v46 = vsel %vm354_vm4, %v1655_v38, 0.0 }
  0xda   :  { %v303_v32 = vpop.f32.mrf.mxu1 }
  0xdb   :  { %v1276_v35 = vpop.f32.mrf.mxu0  ;;  %v304_v36 = vadd.f32 %v303_v32, %v172_v30  ;;  %v370_v37 = vsel %vm354_vm4, %v1648_v31, 0.0  ;;  %v1665_v48 = vadd.f32 %v1617_v57, %v312_v34 }
  0xdc   :  { %v1294_v39 = vpop.f32.mrf.mxu1  ;;  %371 = vadd.xlane.f32.xlu1 %v370_v37  ;;  %374 = vadd.xlane.f32.xlu0 %v373_v33 }
  0xdd   :  { %v175_v40 = vpop.f32.mrf.mxu0  ;;  %v1658_v41 = vadd.f32 %v1617_v57, %v304_v36  ;;  %v315_v42 = vadd.f32 %v1294_v39, %v1276_v35  ;;  %v385_v61 = vsel %vm354_vm4, %v1665_v48, 0.0 }
  0xde   :  { %v306_v43 = vpop.f32.mrf.mxu1 }
  0xdf   :  { %v1279_v44 = vpop.f32.mrf.mxu0  ;;  %v307_v45 = vadd.f32 %v306_v43, %v175_v40  ;;  %v379_v47 = vsel %vm354_vm4, %v1658_v41, 0.0  ;;  %v1671_v54 = vadd.f32 %v1617_v57, %v315_v42 }
  0xe0   :  { %v1297_v49 = vpop.f32.mrf.mxu1  ;;  %377 = vadd.xlane.f32.xlu1 %v376_v46  ;;  %380 = vadd.xlane.f32.xlu0 %v379_v47 }
  0xe1   :  { %v188_v50 = vpop.f32.mrf.mxu0  ;;  %v1668_v51 = vadd.f32 %v1617_v57, %v307_v45  ;;  %v328_v56 = vadd.f32 %v1297_v49, %v1279_v44  ;;  %v388_v3 = vsel %vm354_vm4, %v1671_v54, 0.0 }
  0xe2   :  { %v319_v52 = vpop.f32.mrf.mxu1 }
  0xe3   :  { %v1280_v58 = vpop.f32.mrf.mxu0  ;;  %v320_v59 = vadd.f32 %v319_v52, %v188_v50  ;;  %v382_v60 = vsel %vm354_vm4, %v1668_v51, 0.0  ;;  %v1685_v8 = vadd.f32 %v1617_v57, %v328_v56 }
  0xe4   :  { %v1298_v62 = vpop.f32.mrf.mxu1  ;;  %383 = vadd.xlane.f32.xlu1 %v382_v60  ;;  %386 = vadd.xlane.f32.xlu0 %v385_v61 }
  0xe5   :  { %v191_v63 = vpop.f32.mrf.mxu0  ;;  %v1678_v1 = vadd.f32 %v1617_v57, %v320_v59  ;;  %v331_v4 = vadd.f32 %v1298_v62, %v1280_v58  ;;  %v397_v12 = vsel %vm354_vm4, %v1685_v8, 0.0 }
  0xe6   :  { %v322_v2 = vpop.f32.mrf.mxu1 }
  0xe7   :  { %v323_v6 = vadd.f32 %v322_v2, %v191_v63  ;;  %v391_v7 = vsel %vm354_vm4, %v1678_v1, 0.0  ;;  %v1695_v13 = vadd.f32 %v1617_v57, %v331_v4 }
  0xe8   :  { %389 = vadd.xlane.f32.xlu1 %v388_v3  ;;  %392 = vadd.xlane.f32.xlu0 %v391_v7 }
  0xe9   :  { %v1688_v9 = vadd.f32 %v1617_v57, %v323_v6  ;;  %v400_v15 = vsel %vm354_vm4, %v1695_v13, 0.0 }
  0xeb   :  { %v394_v11 = vsel %vm354_vm4, %v1688_v9, 0.0 }
  0xec   :  { %395 = vadd.xlane.f32.xlu1 %v394_v11  ;;  %398 = vadd.xlane.f32.xlu0 %v397_v12 }
  0xf0   :  { %401 = vadd.xlane.f32.xlu1 %v400_v15 }
 0x157   :  { %v363_v16 = vpop.xlane.xlu1 %362 }
 0x158   :  { %v405_v17 = vmul.f32 0.03125, %v363_v16 }
 0x159   :  { %v357_v18 = vpop.xlane.xlu0 %356 }
 0x15a   :  { %v403_v19 = vmul.f32 0.03125, %v357_v18  ;;  %v1700_v21 = vsub.f32 %v1620_v0, %v405_v17 }
 0x15b   :  { %v366_v20 = vpop.xlane.xlu1 %365 }
 0x15c   :  { %v1703_v23 = vsub.f32 %v1625_v5, %v403_v19  ;;  %v406_v25 = vmul.f32 0.03125, %v366_v20  ;;  %v437_v0 = vmul.f32 %v1700_v21, %v1700_v21 }
 0x15d   :  { %v360_v57 = vpop.xlane.xlu0 %359 }
 0x15e   :  { %v404_v26 = vmul.f32 0.03125, %v360_v57  ;;  %v435_v27 = vmul.f32 %v1703_v23, %v1703_v23  ;;  %v1708_v28 = vsub.f32 %v1630_v10, %v406_v25  ;;  %v457_v10 = vsel %vm354_vm4, %v437_v0, 0.0 }
 0x160   :  { %v1711_v29 = vsub.f32 %v1635_v14, %v404_v26  ;;  %v451_v30 = vsel %vm354_vm4, %v435_v27, 0.0  ;;  %v438_v14 = vmul.f32 %v1708_v28, %v1708_v28 }
 0x161   :  { %452 = vadd.xlane.f32.xlu0 %v451_v30  ;;  %v369_v5 = vpop.xlane.xlu0 %368 }
 0x162   :  { %v407_v32 = vmul.f32 0.03125, %v369_v5  ;;  %v436_v33 = vmul.f32 %v1711_v29, %v1711_v29  ;;  %v460_v44 = vsel %vm354_vm4, %v438_v14, 0.0 }
 0x164   :  { %v1719_v34 = vsub.f32 %v1640_v22, %v407_v32  ;;  %v454_v35 = vsel %vm354_vm4, %v436_v33, 0.0 }
 0x165   :  { %v372_v36 = vpop.xlane.xlu1 %371  ;;  %458 = vadd.xlane.f32.xlu0 %v457_v10  ;;  %455 = vadd.xlane.f32.xlu1 %v454_v35  ;;  %v375_v37 = vpop.xlane.xlu0 %374 }
 0x166   :  { %v408_v39 = vmul.f32 0.03125, %v372_v36  ;;  %v409_v40 = vmul.f32 0.03125, %v375_v37  ;;  %v439_v42 = vmul.f32 %v1719_v34, %v1719_v34 }
 0x168   :  { %v1728_v43 = vsub.f32 %v1648_v31, %v408_v39  ;;  %v1731_v22 = vsub.f32 %v1643_v24, %v409_v40  ;;  %v463_v45 = vsel %vm354_vm4, %v439_v42, 0.0  ;;  %v1363_v40 = vld [vmem:[%s2111_s4] sm:$0xff]  }
 0x169   :  { %v378_v46 = vpop.xlane.xlu1 %377  ;;  %461 = vadd.xlane.f32.xlu1 %v460_v44  ;;  %464 = vadd.xlane.f32.xlu0 %v463_v45  ;;  %v381_v47 = vpop.xlane.xlu0 %380 }
 0x16a   :  { %v410_v49 = vmul.f32 0.03125, %v378_v46  ;;  %v411_v50 = vmul.f32 0.03125, %v381_v47  ;;  %v440_v52 = vmul.f32 %v1728_v43, %v1728_v43  ;;  %v441_v31 = vmul.f32 %v1731_v22, %v1731_v22 }
 0x16c   :  { %v1740_v56 = vsub.f32 %v1655_v38, %v410_v49  ;;  %v1743_v24 = vsub.f32 %v1658_v41, %v411_v50  ;;  %v466_v58 = vsel %vm354_vm4, %v440_v52, 0.0  ;;  %v469_v59 = vsel %vm354_vm4, %v441_v31, 0.0  ;;  %v1362_v41 = vld [vmem:[%s2111_s4 + $0x8] sm:$0xff]  }
 0x16d   :  { %v384_v60 = vpop.xlane.xlu1 %383  ;;  %467 = vadd.xlane.f32.xlu1 %v466_v58  ;;  %470 = vadd.xlane.f32.xlu0 %v469_v59  ;;  %v387_v61 = vpop.xlane.xlu0 %386 }
 0x16e   :  { %v412_v62 = vmul.f32 0.03125, %v384_v60  ;;  %v413_v63 = vmul.f32 0.03125, %v387_v61  ;;  %v442_v2 = vmul.f32 %v1740_v56, %v1740_v56  ;;  %v443_v38 = vmul.f32 %v1743_v24, %v1743_v24  ;;  %1299 = vmatprep.subr.bf16.mxu0 %v1362_v41 }
 0x16f   :  { %1300 = vmatpush3.bf16.msra.mxu0 %v1362_v41 }
 0x170   :  { %v1755_v3 = vsub.f32 %v1668_v51, %v412_v62  ;;  %v1758_v4 = vsub.f32 %v1665_v48, %v413_v63  ;;  %v472_v6 = vsel %vm354_vm4, %v442_v2, 0.0  ;;  %v475_v7 = vsel %vm354_vm4, %v443_v38, 0.0  ;;  %1301 = vmatprep.subr.bf16.mxu0 %v1363_v40 }
 0x171   :  { %v390_v11 = vpop.xlane.xlu1 %389  ;;  %473 = vadd.xlane.f32.xlu1 %v472_v6  ;;  %476 = vadd.xlane.f32.xlu0 %v475_v7  ;;  %v393_v12 = vpop.xlane.xlu0 %392  ;;  %v565_v6 = vsub.s32 1, %v1608_v53 }
 0x172   :  { %v414_v15 = vmul.f32 0.03125, %v390_v11  ;;  %v415_v16 = vmul.f32 0.03125, %v393_v12  ;;  %v444_v17 = vmul.f32 %v1755_v3, %v1755_v3  ;;  %v445_v51 = vmul.f32 %v1758_v4, %v1758_v4 }
 0x173   :  { %1302 = vmatpush3.bf16.msra.mxu0 %v1363_v40 }
 0x174   :  { %v1767_v48 = vsub.f32 %v1671_v54, %v414_v15  ;;  %v1770_v18 = vsub.f32 %v1678_v1, %v415_v16  ;;  %v478_v19 = vsel %vm354_vm4, %v444_v17, 0.0  ;;  %v481_v20 = vsel %vm354_vm4, %v445_v51, 0.0 }
 0x175   :  { %v396_v25 = vpop.xlane.xlu1 %395  ;;  %479 = vadd.xlane.f32.xlu1 %v478_v19  ;;  %482 = vadd.xlane.f32.xlu0 %v481_v20  ;;  %v399_v57 = vpop.xlane.xlu0 %398  ;;  %v1803_v19 = vrot.slane %v1614_v55, %v565_v6  ;;  %v585_v20 = vsub.s32 2, %v1608_v53 }
 0x176   :  { %v416_v26 = vmul.f32 0.03125, %v396_v25  ;;  %v417_v27 = vmul.f32 0.03125, %v399_v57  ;;  %v446_v30 = vmul.f32 %v1767_v48, %v1767_v48  ;;  %v447_v54 = vmul.f32 %v1770_v18, %v1770_v18 }
 0x178   :  { %v1779_v0 = vsub.f32 %v1688_v9, %v416_v26  ;;  %v1782_v1 = vsub.f32 %v1685_v8, %v417_v27  ;;  %v484_v5 = vsel %vm354_vm4, %v446_v30, 0.0  ;;  %v487_v32 = vsel %vm354_vm4, %v447_v54, 0.0 }
 0x179   :  { %v402_v33 = vpop.xlane.xlu1 %401  ;;  %485 = vadd.xlane.f32.xlu1 %v484_v5  ;;  %488 = vadd.xlane.f32.xlu0 %v487_v32 }
 0x17a   :  { %v418_v10 = vmul.f32 0.03125, %v402_v33  ;;  %v448_v35 = vmul.f32 %v1779_v0, %v1779_v0  ;;  %v449_v14 = vmul.f32 %v1782_v1, %v1782_v1  ;;  %v1808_v33 = vrot.slane %v1614_v55, %v585_v20 }
 0x17c   :  { %v1791_v9 = vsub.f32 %v1695_v13, %v418_v10  ;;  %v490_v8 = vsel %vm354_vm4, %v448_v35, 0.0  ;;  %v493_v36 = vsel %vm354_vm4, %v449_v14, 0.0 }
 0x17d   :  { %491 = vadd.xlane.f32.xlu1 %v490_v8  ;;  %494 = vadd.xlane.f32.xlu0 %v493_v36 }
 0x17e   :  { %v450_v37 = vmul.f32 %v1791_v9, %v1791_v9 }
 0x180   :  { %v496_v39 = vsel %vm354_vm4, %v450_v37, 0.0 }
 0x181   :  { %497 = vadd.xlane.f32.xlu1 %v496_v39 }
 0x1ea   :  { %v453_v13 = vpop.xlane.xlu0 %452 }
 0x1eb   :  { %v499_v42 = vmul.f32 0.03125, %v453_v13 }
 0x1ed   :  { %v515_v44 = vadd.f32 1e-05, %v499_v42 }
 0x1ee   :  { %v456_v45 = vpop.xlane.xlu1 %455  ;;  %v459_v46 = vpop.xlane.xlu0 %458 }
 0x1ef   :  { %1364 = vrsqrt.f32 %v515_v44  ;;  %v500_v47 = vmul.f32 0.03125, %v456_v45  ;;  %v501_v49 = vmul.f32 0.03125, %v459_v46 }
 0x1f1   :  { %v516_v50 = vadd.f32 1e-05, %v500_v47  ;;  %v517_v52 = vadd.f32 1e-05, %v501_v49 }
 0x1f2   :  { %v462_v31 = vpop.xlane.xlu1 %461  ;;  %v465_v58 = vpop.xlane.xlu0 %464 }
 0x1f3   :  { %1366 = vrsqrt.f32 %v516_v50  ;;  %v502_v59 = vmul.f32 0.03125, %v462_v31  ;;  %v503_v60 = vmul.f32 0.03125, %v465_v58 }
 0x1f4   :  { %1368 = vrsqrt.f32 %v517_v52 }
 0x1f5   :  { %v518_v61 = vadd.f32 1e-05, %v502_v59  ;;  %v519_v62 = vadd.f32 1e-05, %v503_v60 }
 0x1f6   :  { %v468_v63 = vpop.xlane.xlu1 %467  ;;  %v471_v2 = vpop.xlane.xlu0 %470 }
 0x1f7   :  { %1370 = vrsqrt.f32 %v518_v61  ;;  %v504_v38 = vmul.f32 0.03125, %v468_v63  ;;  %v505_v41 = vmul.f32 0.03125, %v471_v2 }
 0x1f8   :  { %1372 = vrsqrt.f32 %v519_v62 }
 0x1f9   :  { %v520_v7 = vadd.f32 1e-05, %v504_v38  ;;  %v521_v11 = vadd.f32 1e-05, %v505_v41 }
 0x1fa   :  { %v474_v12 = vpop.xlane.xlu1 %473  ;;  %v477_v15 = vpop.xlane.xlu0 %476 }
 0x1fb   :  { %1374 = vrsqrt.f32 %v520_v7  ;;  %v506_v16 = vmul.f32 0.03125, %v474_v12  ;;  %v507_v17 = vmul.f32 0.03125, %v477_v15 }
 0x1fc   :  { %v1365_v51 = vpop.eup %1364  ;;  %1376 = vrsqrt.f32 %v521_v11 }
 0x1fd   :  { %v522_v25 = vadd.f32 1e-05, %v506_v16  ;;  %v523_v57 = vadd.f32 1e-05, %v507_v17  ;;  %v547_v26 = vmul.f32 %v1365_v51, %v1703_v23 }
 0x1fe   :  { %v480_v27 = vpop.xlane.xlu1 %479  ;;  %v483_v30 = vpop.xlane.xlu0 %482 }
 0x1ff   :  { %1378 = vrsqrt.f32 %v522_v25  ;;  %v508_v54 = vmul.f32 0.03125, %v480_v27  ;;  %v509_v5 = vmul.f32 0.03125, %v483_v30  ;;  %v567_v10 = vmul.f32 %v1803_v19, %v547_v26 }
 0x200   :  { %v1367_v32 = vpop.eup %1366  ;;  %1380 = vrsqrt.f32 %v523_v57 }
 0x201   :  { %v1369_v35 = vpop.eup %1368  ;;  %v524_v14 = vadd.f32 1e-05, %v508_v54  ;;  %v525_v8 = vadd.f32 1e-05, %v509_v5  ;;  %v548_v36 = vmul.f32 %v1367_v32, %v1711_v29  ;;  %v587_v46 = vadd.f32 %v1808_v33, %v567_v10 }
 0x202   :  { %v549_v37 = vmul.f32 %v1369_v35, %v1700_v21  ;;  %v486_v23 = vpop.xlane.xlu1 %485  ;;  %v489_v39 = vpop.xlane.xlu0 %488 }
 0x203   :  { %1382 = vrsqrt.f32 %v524_v14  ;;  %v510_v40 = vmul.f32 0.03125, %v486_v23  ;;  %v511_v13 = vmul.f32 0.03125, %v489_v39  ;;  %v568_v42 = vmul.f32 %v1803_v19, %v548_v36 }
 0x204   :  { %v1371_v44 = vpop.eup %1370  ;;  %v569_v45 = vmul.f32 %v1803_v19, %v549_v37  ;;  %1384 = vrsqrt.f32 %v525_v8  ;;  %v603_v2 = vmax.f32 %v587_v46, 0.0 }
 0x205   :  { %v1373_v47 = vpop.eup %1372  ;;  %v550_v49 = vmul.f32 %v1371_v44, %v1708_v28  ;;  %v526_v50 = vadd.f32 1e-05, %v510_v40  ;;  %v527_v29 = vadd.f32 1e-05, %v511_v13  ;;  %v588_v21 = vadd.f32 %v1808_v33, %v568_v42 }
 0x206   :  { %v589_v52 = vadd.f32 %v1808_v33, %v569_v45  ;;  %v492_v31 = vpop.xlane.xlu1 %491  ;;  %v495_v58 = vpop.xlane.xlu0 %494  ;;  %v551_v59 = vmul.f32 %v1373_v47, %v1719_v34 }
 0x207   :  { %v570_v60 = vmul.f32 %v1803_v19, %v550_v49  ;;  %1386 = vrsqrt.f32 %v526_v50  ;;  %v512_v61 = vmul.f32 0.03125, %v492_v31  ;;  %v513_v62 = vmul.f32 0.03125, %v495_v58 }
 0x208   :  { %v1375_v63 = vpop.eup %1374  ;;  %1388 = vrsqrt.f32 %v527_v29  ;;  %v604_v38 = vmax.f32 %v588_v21, 0.0  ;;  %v571_v28 = vmul.f32 %v1803_v19, %v551_v59  ;;  %v605_v16 = vmax.f32 %v589_v52, 0.0 }
 0x209   :  { %v1377_v41 = vpop.eup %1376  ;;  %v590_v6 = vadd.f32 %v1808_v33, %v570_v60  ;;  %v528_v7 = vadd.f32 1e-05, %v512_v61  ;;  %v529_v11 = vadd.f32 1e-05, %v513_v62  ;;  %v552_v12 = vmul.f32 %v1375_v63, %v1728_v43 }
 0x20a   :  { %v498_v15 = vpop.xlane.xlu1 %497  ;;  %v619_v34 = vpack.c.bf16 %v604_v38, %v603_v2  ;;  %v591_v17 = vadd.f32 %v1808_v33, %v571_v28  ;;  %v553_v51 = vmul.f32 %v1377_v41, %v1731_v22 }
 0x20b   :  { %1390 = vrsqrt.f32 %v528_v7  ;;  %v514_v20 = vmul.f32 0.03125, %v498_v15  ;;  %v606_v25 = vmax.f32 %v590_v6, 0.0  ;;  %v572_v57 = vmul.f32 %v1803_v19, %v552_v12 }
 0x20c   :  { %v1379_v26 = vpop.eup %1378  ;;  %1392 = vrsqrt.f32 %v529_v11  ;;  %1303 = vmatprep.mubr.msk.bf16.mxu0 %vm354_vm4, %v619_v34  ;;  %v573_v27 = vmul.f32 %v1803_v19, %v553_v51  ;;  %v607_v10 = vmax.f32 %v591_v17, 0.0 }
 0x20d   :  { %v1381_v30 = vpop.eup %1380  ;;  %v530_v43 = vadd.f32 1e-05, %v514_v20  ;;  %v620_v54 = vpack.c.bf16 %v606_v25, %v605_v16  ;;  %v592_v5 = vadd.f32 %v1808_v33, %v572_v57  ;;  %v554_v32 = vmul.f32 %v1379_v26, %v1740_v56 }
 0x20e   :  { %v555_v22 = vmul.f32 %v1381_v30, %v1743_v24  ;;  %v593_v8 = vadd.f32 %v1808_v33, %v573_v27 }
 0x20f   :  { %1394 = vrsqrt.f32 %v530_v43  ;;  %1304 = vmatmul.mubr.msk.bf16.vlgmr.msra.gmra.mxu0 %vm354_vm4, %v620_v54  ;;  %v608_v35 = vmax.f32 %v592_v5, 0.0  ;;  %v574_v14 = vmul.f32 %v1803_v19, %v554_v32 }
 0x210   :  { %v1383_v36 = vpop.eup %1382  ;;  %v575_v37 = vmul.f32 %v1803_v19, %v555_v22  ;;  %v609_v24 = vmax.f32 %v593_v8, 0.0  ;;  %v633_v22 = vsub.s32 3, %v1608_v53 }
 0x211   :  { %v1385_v23 = vpop.eup %1384  ;;  %v621_v39 = vpack.c.bf16 %v608_v35, %v607_v10  ;;  %v594_v40 = vadd.f32 %v1808_v33, %v574_v14  ;;  %v556_v56 = vmul.f32 %v1383_v36, %v1755_v3 }
 0x212   :  { %v557_v13 = vmul.f32 %v1385_v23, %v1758_v4  ;;  %v595_v45 = vadd.f32 %v1808_v33, %v575_v37  ;;  %v634_v14 = vrot.slane %v1614_v55, %v633_v22 }
 0x213   :  { %1307 = vmatprep.mubr.msk.bf16.mxu0 %vm354_vm4, %v621_v39  ;;  %v610_v42 = vmax.f32 %v594_v40, 0.0  ;;  %v576_v44 = vmul.f32 %v1803_v19, %v556_v56 }
 0x214   :  { %v1387_v46 = vpop.eup %1386  ;;  %v577_v47 = vmul.f32 %v1803_v19, %v557_v13  ;;  %v611_v4 = vmax.f32 %v595_v45, 0.0 }
 0x215   :  { %v1389_v49 = vpop.eup %1388  ;;  %v622_v50 = vpack.c.bf16 %v610_v42, %v609_v24  ;;  %v596_v29 = vadd.f32 %v1808_v33, %v576_v44  ;;  %v558_v21 = vmul.f32 %v1387_v46, %v1767_v48 }
 0x216   :  { %v559_v3 = vmul.f32 %v1389_v49, %v1770_v18  ;;  %v597_v58 = vadd.f32 %v1808_v33, %v577_v47 }
 0x217   :  { %1308 = vmatmul.mubr.msk.bf16.gmra.mxu0 %vm354_vm4, %v622_v50  ;;  %v612_v52 = vmax.f32 %v596_v29, 0.0  ;;  %v578_v31 = vmul.f32 %v1803_v19, %v558_v21 }
 0x218   :  { %v1391_v59 = vpop.eup %1390  ;;  %v579_v60 = vmul.f32 %v1803_v19, %v559_v3  ;;  %v613_v18 = vmax.f32 %v597_v58, 0.0 }
 0x219   :  { %v1393_v61 = vpop.eup %1392  ;;  %v623_v62 = vpack.c.bf16 %v612_v52, %v611_v4  ;;  %v598_v63 = vadd.f32 %v1808_v33, %v578_v31  ;;  %v560_v2 = vmul.f32 %v1391_v59, %v1779_v0 }
 0x21a   :  { %v561_v48 = vmul.f32 %v1393_v61, %v1782_v1  ;;  %v599_v41 = vadd.f32 %v1808_v33, %v579_v60 }
 0x21b   :  { %1311 = vmatprep.mubr.msk.bf16.mxu0 %vm354_vm4, %v623_v62  ;;  %v614_v38 = vmax.f32 %v598_v63, 0.0  ;;  %v580_v28 = vmul.f32 %v1803_v19, %v560_v2 }
 0x21c   :  { %v1395_v6 = vpop.eup %1394  ;;  %v581_v7 = vmul.f32 %v1803_v19, %v561_v48  ;;  %v615_v0 = vmax.f32 %v599_v41, 0.0 }
 0x21d   :  { %v624_v11 = vpack.c.bf16 %v614_v38, %v613_v18  ;;  %v600_v12 = vadd.f32 %v1808_v33, %v580_v28  ;;  %v562_v15 = vmul.f32 %v1395_v6, %v1791_v9 }
 0x21e   :  { %v601_v16 = vadd.f32 %v1808_v33, %v581_v7 }
 0x21f   :  { %1312 = vmatmul.mubr.msk.bf16.gmra.mxu0 %vm354_vm4, %v624_v11  ;;  %v616_v1 = vmax.f32 %v600_v12, 0.0  ;;  %v582_v34 = vmul.f32 %v1803_v19, %v562_v15 }
 0x220   :  { %v617_v20 = vmax.f32 %v601_v16, 0.0 }
 0x221   :  { %v625_v17 = vpack.c.bf16 %v616_v1, %v615_v0  ;;  %v602_v51 = vadd.f32 %v1808_v33, %v582_v34 }
 0x223   :  { %1315 = vmatprep.mubr.msk.bf16.mxu0 %vm354_vm4, %v625_v17  ;;  %v618_v25 = vmax.f32 %v602_v51, 0.0 }
 0x225   :  { %v626_v57 = vpack.c.bf16 %v618_v25, %v617_v20 }
 0x227   :  { %1316 = vmatmul.mubr.msk.bf16.gmra.mxu0 %vm354_vm4, %v626_v57 }
 0x2cf   :  { %v1305_v26 = vpop.f32.mrf.mxu0 }
 0x2d0   :  { %v1892_v59 = vadd.f32 %v1305_v26, %v634_v14 }
 0x2d1   :  { %v705_v9 = vpop.f32.mrf.mxu0 }
 0x2d2   :  { %v1900_v63 = vadd.f32 %v705_v9, %v634_v14  ;;  %v774_v18 = vsel %vm354_vm4, %v1892_v59, 0.0 }
 0x2d3   :  { %v1306_v27 = vpop.f32.mrf.mxu0 }
 0x2d4   :  { %v1902_v2 = vadd.f32 %v1306_v27, %v634_v14  ;;  %v768_v41 = vsel %vm354_vm4, %v1900_v63, 0.0 }
 0x2d5   :  { %v708_v30 = vpop.f32.mrf.mxu0 }
 0x2d6   :  { %v1908_v38 = vadd.f32 %v708_v30, %v634_v14  ;;  %v777_v28 = vsel %vm354_vm4, %v1902_v2, 0.0 }
 0x2d7   :  { %v1309_v43 = vpop.f32.mrf.mxu0 }
 0x2d8   :  { %v1876_v50 = vadd.f32 %v1309_v43, %v634_v14  ;;  %v771_v6 = vsel %vm354_vm4, %v1908_v38, 0.0 }
 0x2d9   :  { %v721_v54 = vpop.f32.mrf.mxu0 }
 0x2da   :  { %v1884_v4 = vadd.f32 %v721_v54, %v634_v14  ;;  %v786_v58 = vsel %vm354_vm4, %v1876_v50, 0.0 }
 0x2db   :  { %v1310_v5 = vpop.f32.mrf.mxu0 }
 0x2dc   :  { %v1886_v52 = vadd.f32 %v1310_v5, %v634_v14  ;;  %v780_v62 = vsel %vm354_vm4, %v1884_v4, 0.0 }
 0x2dd   :  { %v724_v19 = vpop.f32.mrf.mxu0 }
 0x2de   :  { %v1894_v60 = vadd.f32 %v724_v19, %v634_v14  ;;  %v789_v61 = vsel %vm354_vm4, %v1886_v52, 0.0 }
 0x2df   :  { %v1313_v32 = vpop.f32.mrf.mxu0 }
 0x2e0   :  { %v746_v24 = vadd.f32 %v1313_v32, %v634_v14  ;;  %v783_v48 = vsel %vm354_vm4, %v1894_v60, 0.0 }
 0x2e1   :  { %v737_v10 = vpop.f32.mrf.mxu0 }
 0x2e2   :  { %v1870_v46 = vadd.f32 %v737_v10, %v634_v14  ;;  %v798_v49 = vsel %vm354_vm4, %v746_v24, 0.0 }
 0x2e3   :  { %v1314_v33 = vpop.f32.mrf.mxu0 }
 0x2e4   :  { %v1872_v55 = vadd.f32 %v1314_v33, %v634_v14  ;;  %v792_v3 = vsel %vm354_vm4, %v1870_v46, 0.0 }
 0x2e5   :  { %v740_v35 = vpop.f32.mrf.mxu0 }
 0x2e6   :  { %v1878_v29 = vadd.f32 %v740_v35, %v634_v14  ;;  %v801_v21 = vsel %vm354_vm4, %v1872_v55, 0.0 }
 0x2e7   :  { %v1317_v8 = vpop.f32.mrf.mxu0 }
 0x2e8   :  { %v762_v36 = vadd.f32 %v1317_v8, %v634_v14  ;;  %v795_v31 = vsel %vm354_vm4, %v1878_v29, 0.0 }
 0x2e9   :  { %v753_v37 = vpop.f32.mrf.mxu0 }
 0x2ea   :  { %v754_v23 = vadd.f32 %v753_v37, %v634_v14  ;;  %v810_v39 = vsel %vm354_vm4, %v762_v36, 0.0 }
 0x2eb   :  { %811 = vadd.xlane.f32.xlu1 %v810_v39  ;;  %v1318_v40 = vpop.f32.mrf.mxu0 }
 0x2ec   :  { %v765_v56 = vadd.f32 %v1318_v40, %v634_v14  ;;  %v804_v45 = vsel %vm354_vm4, %v754_v23, 0.0 }
 0x2ed   :  { %v756_v13 = vpop.f32.mrf.mxu0 }
 0x2ee   :  { %v757_v42 = vadd.f32 %v756_v13, %v634_v14  ;;  %v813_v44 = vsel %vm354_vm4, %v765_v56, 0.0 }
 0x2ef   :  { %814 = vadd.xlane.f32.xlu0 %v813_v44  ;;  %805 = vadd.xlane.f32.xlu1 %v804_v45 }
 0x2f0   :  { %v807_v47 = vsel %vm354_vm4, %v757_v42, 0.0 }
 0x2f3   :  { %808 = vadd.xlane.f32.xlu0 %v807_v47  ;;  %799 = vadd.xlane.f32.xlu1 %v798_v49 }
 0x2f7   :  { %802 = vadd.xlane.f32.xlu0 %v801_v21  ;;  %793 = vadd.xlane.f32.xlu1 %v792_v3 }
 0x2fb   :  { %796 = vadd.xlane.f32.xlu0 %v795_v31  ;;  %787 = vadd.xlane.f32.xlu1 %v786_v58 }
 0x2ff   :  { %790 = vadd.xlane.f32.xlu0 %v789_v61  ;;  %781 = vadd.xlane.f32.xlu1 %v780_v62 }
 0x303   :  { %784 = vadd.xlane.f32.xlu0 %v783_v48  ;;  %775 = vadd.xlane.f32.xlu1 %v774_v18 }
 0x307   :  { %778 = vadd.xlane.f32.xlu0 %v777_v28  ;;  %769 = vadd.xlane.f32.xlu1 %v768_v41 }
 0x30b   :  { %772 = vadd.xlane.f32.xlu0 %v771_v6 }
 0x374   :  { %v812_v7 = vpop.xlane.xlu1 %811 }
 0x375   :  { %v830_v11 = vmul.f32 0.03125, %v812_v7 }
 0x377   :  { %v1916_v12 = vsub.f32 %v762_v36, %v830_v11 }
 0x378   :  { %v815_v15 = vpop.xlane.xlu0 %814  ;;  %v806_v0 = vpop.xlane.xlu1 %805 }
 0x379   :  { %v831_v1 = vmul.f32 0.03125, %v815_v15  ;;  %v828_v34 = vmul.f32 0.03125, %v806_v0  ;;  %v862_v16 = vmul.f32 %v1916_v12, %v1916_v12 }
 0x37b   :  { %v1920_v17 = vsub.f32 %v765_v56, %v831_v1  ;;  %v1922_v51 = vsub.f32 %v754_v23, %v828_v34  ;;  %v906_v20 = vsel %vm354_vm4, %v862_v16, 0.0 }
 0x37c   :  { %v809_v25 = vpop.xlane.xlu0 %808  ;;  %907 = vadd.xlane.f32.xlu1 %v906_v20  ;;  %v800_v57 = vpop.xlane.xlu1 %799 }
 0x37d   :  { %v829_v26 = vmul.f32 0.03125, %v809_v25  ;;  %v826_v9 = vmul.f32 0.03125, %v800_v57  ;;  %v863_v27 = vmul.f32 %v1920_v17, %v1920_v17  ;;  %v860_v30 = vmul.f32 %v1922_v51, %v1922_v51 }
 0x37f   :  { %v1929_v43 = vsub.f32 %v757_v42, %v829_v26  ;;  %v1931_v54 = vsub.f32 %v746_v24, %v826_v9  ;;  %v909_v5 = vsel %vm354_vm4, %v863_v27, 0.0  ;;  %v900_v19 = vsel %vm354_vm4, %v860_v30, 0.0 }
 0x380   :  { %910 = vadd.xlane.f32.xlu0 %v909_v5  ;;  %v803_v32 = vpop.xlane.xlu0 %802  ;;  %901 = vadd.xlane.f32.xlu1 %v900_v19  ;;  %v794_v10 = vpop.xlane.xlu1 %793 }
 0x381   :  { %v827_v22 = vmul.f32 0.03125, %v803_v32  ;;  %v824_v33 = vmul.f32 0.03125, %v794_v10  ;;  %v861_v35 = vmul.f32 %v1929_v43, %v1929_v43  ;;  %v858_v14 = vmul.f32 %v1931_v54, %v1931_v54 }
 0x383   :  { %v1940_v8 = vsub.f32 %v1872_v55, %v827_v22  ;;  %v1943_v36 = vsub.f32 %v1870_v46, %v824_v33  ;;  %v903_v37 = vsel %vm354_vm4, %v861_v35, 0.0  ;;  %v894_v23 = vsel %vm354_vm4, %v858_v14, 0.0  ;;  %v2012_v33 = vld [vmem:[%s2112_s5] sm:$0xff]  ;;  %s1454_s5 = smov [#allocation2]  }
 0x384   :  { %904 = vadd.xlane.f32.xlu0 %v903_v37  ;;  %v797_v39 = vpop.xlane.xlu0 %796  ;;  %895 = vadd.xlane.f32.xlu1 %v894_v23  ;;  %v788_v40 = vpop.xlane.xlu1 %787  ;;  %v1451_v22 = vmov 0.0   ;;  %s1166_s16 = sshll.u32 %s1454_s5, 4  ;;  %s1167_s16 = int_to_ptr.vmem [resolvable:$true] %s1166_s16 }
 0x385   :  { %v825_v56 = vmul.f32 0.03125, %v797_v39  ;;  %v822_v13 = vmul.f32 0.03125, %v788_v40  ;;  %v859_v24 = vmul.f32 %v1940_v8, %v1940_v8  ;;  %v856_v42 = vmul.f32 %v1943_v36, %v1943_v36  ;;  %1319 = vmatprep.subr.mxu1 %v1451_v22  ;;  %1351 = vmatprep.mubr.msk.f32.mxu1 %vm1452_vm5, %v1451_v22  ;;  %s1429_s17 = scalar_lea.vmem %s1167_s16, 16  ;;  %s1433_s18 = scalar_lea.vmem %s1167_s16, 32 }
 0x386   :  { %p1430_p0 = scmp.ne.s32.totalorder %s1167_s16, %s1429_s17  ;;  %p1434_p1 = scmp.lt.s32.totalorder %s1167_s16, %s1167_s16 }
 0x387   :  { %v1952_v44 = vsub.f32 %v1878_v29, %v825_v56  ;;  %v1955_v45 = vsub.f32 %v1876_v50, %v822_v13  ;;  %v897_v46 = vsel %vm354_vm4, %v859_v24, 0.0  ;;  %v888_v55 = vsel %vm354_vm4, %v856_v42, 0.0  ;;  %p1435_p2 = scmp.lt.s32.totalorder %s1433_s18, %s1429_s17 }
 0x388   :  { %898 = vadd.xlane.f32.xlu0 %v897_v46  ;;  %v791_v47 = vpop.xlane.xlu0 %790  ;;  %889 = vadd.xlane.f32.xlu1 %v888_v55  ;;  %v782_v49 = vpop.xlane.xlu1 %781 }
 0x389   :  { %v823_v21 = vmul.f32 0.03125, %v791_v47  ;;  %v820_v3 = vmul.f32 0.03125, %v782_v49  ;;  %v857_v31 = vmul.f32 %v1952_v44, %v1952_v44  ;;  %v854_v29 = vmul.f32 %v1955_v45, %v1955_v45  ;;  %p1436_p3 = por %p1435_p2, %p1434_p1 }
 0x38b   :  { %v1964_v58 = vsub.f32 %v1886_v52, %v823_v21  ;;  %v1967_v50 = vsub.f32 %v1884_v4, %v820_v3  ;;  %v891_v61 = vsel %vm354_vm4, %v857_v31, 0.0  ;;  %v882_v62 = vsel %vm354_vm4, %v854_v29, 0.0  ;;  %p1437_p4 = pnand %p1436_p3, %p1430_p0 }
 0x38c   :  { %892 = vadd.xlane.f32.xlu0 %v891_v61  ;;  %v785_v48 = vpop.xlane.xlu0 %784  ;;  %883 = vadd.xlane.f32.xlu1 %v882_v62  ;;  %v776_v18 = vpop.xlane.xlu1 %775  ;;  %v978_v61 = vsub.s32 4, %v1608_v53 }
 0x38d   :  { %v821_v28 = vmul.f32 0.03125, %v785_v48  ;;  %v818_v41 = vmul.f32 0.03125, %v776_v18  ;;  %v855_v6 = vmul.f32 %v1964_v58, %v1964_v58  ;;  %v852_v52 = vmul.f32 %v1967_v50, %v1967_v50 }
 0x38f   :  { %v1976_v7 = vsub.f32 %v1894_v60, %v821_v28  ;;  %v1979_v4 = vsub.f32 %v1892_v59, %v818_v41  ;;  %v885_v11 = vsel %vm354_vm4, %v855_v6, 0.0  ;;  %v876_v15 = vsel %vm354_vm4, %v852_v52, 0.0 }
 0x390   :  { %886 = vadd.xlane.f32.xlu0 %v885_v11  ;;  %v779_v0 = vpop.xlane.xlu0 %778  ;;  %877 = vadd.xlane.f32.xlu1 %v876_v15  ;;  %v770_v1 = vpop.xlane.xlu1 %769  ;;  %v2017_v41 = vrot.slane %v2012_v33, %v978_v61  ;;  %v998_v6 = vsub.s32 5, %v1608_v53 }
 0x391   :  { %v819_v34 = vmul.f32 0.03125, %v779_v0  ;;  %v816_v16 = vmul.f32 0.03125, %v770_v1  ;;  %v853_v20 = vmul.f32 %v1976_v7, %v1976_v7  ;;  %v850_v60 = vmul.f32 %v1979_v4, %v1979_v4 }
 0x393   :  { %v1988_v25 = vsub.f32 %v1902_v2, %v819_v34  ;;  %v1991_v59 = vsub.f32 %v1900_v63, %v816_v16  ;;  %v879_v57 = vsel %vm354_vm4, %v853_v20, 0.0  ;;  %v870_v26 = vsel %vm354_vm4, %v850_v60, 0.0 }
 0x394   :  { %880 = vadd.xlane.f32.xlu0 %v879_v57  ;;  %v773_v9 = vpop.xlane.xlu0 %772  ;;  %871 = vadd.xlane.f32.xlu1 %v870_v26  ;;  %v2023_v20 = vrot.slane %v2012_v33, %v998_v6 }
 0x395   :  { %v817_v27 = vmul.f32 0.03125, %v773_v9  ;;  %v851_v30 = vmul.f32 %v1988_v25, %v1988_v25  ;;  %v848_v5 = vmul.f32 %v1991_v59, %v1991_v59 }
 0x397   :  { %v2000_v2 = vsub.f32 %v1908_v38, %v817_v27  ;;  %v873_v63 = vsel %vm354_vm4, %v851_v30, 0.0  ;;  %v864_v19 = vsel %vm354_vm4, %v848_v5, 0.0  ;;  %v1453_v38 = vmov 0  }
 0x398   :  { %874 = vadd.xlane.f32.xlu0 %v873_v63  ;;  %865 = vadd.xlane.f32.xlu1 %v864_v19 }
 0x399   :  { %v849_v32 = vmul.f32 %v2000_v2, %v2000_v2  ;;  %1360 = vset.pattern.permute.xlu0 %v1453_v38 }
 0x39b   :  { %v867_v10 = vsel %vm354_vm4, %v849_v32, 0.0 }
 0x39c   :  { %868 = vadd.xlane.f32.xlu0 %v867_v10 }
 0x3b2   :  { %1034 = vperm.xlu0 %1360, %v2012_v33  }
 0x405   :  { %v908_v35 = vpop.xlane.xlu1 %907 }
 0x406   :  { %v926_v14 = vmul.f32 0.03125, %v908_v35 }
 0x408   :  { %v942_v37 = vadd.f32 1e-05, %v926_v14 }
 0x409   :  { %v911_v23 = vpop.xlane.xlu0 %910  ;;  %v902_v39 = vpop.xlane.xlu1 %901 }
 0x40a   :  { %1396 = vrsqrt.f32 %v942_v37  ;;  %v927_v40 = vmul.f32 0.03125, %v911_v23  ;;  %v924_v56 = vmul.f32 0.03125, %v902_v39 }
 0x40c   :  { %v943_v13 = vadd.f32 1e-05, %v927_v40  ;;  %v940_v24 = vadd.f32 1e-05, %v924_v56 }
 0x40d   :  { %v905_v42 = vpop.xlane.xlu0 %904  ;;  %v896_v55 = vpop.xlane.xlu1 %895 }
 0x40e   :  { %1398 = vrsqrt.f32 %v943_v13  ;;  %v925_v46 = vmul.f32 0.03125, %v905_v42  ;;  %v922_v21 = vmul.f32 0.03125, %v896_v55 }
 0x40f   :  { %1400 = vrsqrt.f32 %v940_v24 }
 0x410   :  { %v941_v47 = vadd.f32 1e-05, %v925_v46  ;;  %v938_v62 = vadd.f32 1e-05, %v922_v21 }
 0x411   :  { %v899_v49 = vpop.xlane.xlu0 %898  ;;  %v890_v28 = vpop.xlane.xlu1 %889 }
 0x412   :  { %1402 = vrsqrt.f32 %v941_v47  ;;  %v923_v3 = vmul.f32 0.03125, %v899_v49  ;;  %v920_v11 = vmul.f32 0.03125, %v890_v28 }
 0x414   :  { %v939_v31 = vadd.f32 1e-05, %v923_v3  ;;  %v936_v57 = vadd.f32 1e-05, %v920_v11 }
 0x415   :  { %v893_v29 = vpop.xlane.xlu0 %892  ;;  %v884_v26 = vpop.xlane.xlu1 %883 }
 0x416   :  { %1404 = vrsqrt.f32 %v939_v31  ;;  %v921_v48 = vmul.f32 0.03125, %v893_v29  ;;  %v918_v5 = vmul.f32 0.03125, %v884_v26 }
 0x417   :  { %v1397_v18 = vpop.eup %1396  ;;  %1406 = vrsqrt.f32 %v938_v62 }
 0x418   :  { %v974_v52 = vmul.f32 %v1397_v18, %v1916_v12  ;;  %v937_v15 = vadd.f32 1e-05, %v921_v48  ;;  %v934_v14 = vadd.f32 1e-05, %v918_v5 }
 0x419   :  { %v887_v0 = vpop.xlane.xlu0 %886  ;;  %v878_v23 = vpop.xlane.xlu1 %877 }
 0x41a   :  { %v919_v16 = vmul.f32 0.03125, %v887_v0  ;;  %1408 = vrsqrt.f32 %v937_v15  ;;  %v994_v53 = vmul.f32 %v2017_v41, %v974_v52  ;;  %v916_v13 = vmul.f32 0.03125, %v878_v23 }
 0x41b   :  { %v1399_v1 = vpop.eup %1398  ;;  %1410 = vrsqrt.f32 %v936_v57 }
 0x41c   :  { %v975_v34 = vmul.f32 %v1399_v1, %v1920_v17  ;;  %v1401_v60 = vpop.eup %1400  ;;  %v935_v63 = vadd.f32 1e-05, %v919_v16  ;;  %v1014_v10 = vadd.f32 %v2023_v20, %v994_v53  ;;  %v932_v21 = vadd.f32 1e-05, %v916_v13 }
 0x41d   :  { %v972_v17 = vmul.f32 %v1401_v60, %v1922_v51  ;;  %v881_v19 = vpop.xlane.xlu0 %880  ;;  %v872_v29 = vpop.xlane.xlu1 %871 }
 0x41e   :  { %v995_v9 = vmul.f32 %v2017_v41, %v975_v34  ;;  %1412 = vrsqrt.f32 %v935_v63  ;;  %v917_v37 = vmul.f32 0.03125, %v881_v19  ;;  %v1030_v39 = vmax.f32 %v1014_v10, 0.0 }
 0x41f   :  { %v1403_v12 = vpop.eup %1402  ;;  %v992_v40 = vmul.f32 %v2017_v41, %v972_v17  ;;  %1414 = vrsqrt.f32 %v934_v14  ;;  %v914_v18 = vmul.f32 0.03125, %v872_v29 }
 0x420   :  { %v973_v27 = vmul.f32 %v1403_v12, %v1929_v43  ;;  %v1015_v30 = vadd.f32 %v2023_v20, %v995_v9  ;;  %v933_v24 = vadd.f32 1e-05, %v917_v37 }
 0x421   :  { %v875_v46 = vpop.xlane.xlu0 %874  ;;  %v930_v1 = vadd.f32 1e-05, %v914_v18  ;;  %v866_v57 = vpop.xlane.xlu1 %865 }
 0x422   :  { %v1031_v32 = vmax.f32 %v1015_v30, 0.0  ;;  %v993_v35 = vmul.f32 %v2017_v41, %v973_v27  ;;  %1416 = vrsqrt.f32 %v933_v24  ;;  %v915_v3 = vmul.f32 0.03125, %v875_v46 }
 0x423   :  { %v1405_v38 = vpop.eup %1404  ;;  %1418 = vrsqrt.f32 %v932_v21  ;;  %v912_v53 = vmul.f32 0.03125, %v866_v57 }
 0x424   :  { %1320 = vmatpush3.xpose.msk.msra.mxu1 %vm354_vm4, %v1031_v32  ;;  %v971_v43 = vmul.f32 %v1405_v38, %v1940_v8  ;;  %v1013_v51 = vadd.f32 %v2023_v20, %v993_v35  ;;  %v1407_v56 = vpop.eup %1406  ;;  %v1012_v8 = vadd.f32 %v2023_v20, %v992_v40  ;;  %v931_v28 = vadd.f32 1e-05, %v915_v3 }
 0x425   :  { %1321 = vmatprep.subr.mxu1 %v1451_v22  ;;  %v970_v42 = vmul.f32 %v1407_v56, %v1931_v54  ;;  %v869_v11 = vpop.xlane.xlu0 %868  ;;  %v928_v17 = vadd.f32 1e-05, %v912_v53 }
 0x426   :  { %v1029_v55 = vmax.f32 %v1013_v51, 0.0  ;;  %v991_v47 = vmul.f32 %v2017_v41, %v971_v43  ;;  %v1028_v61 = vmax.f32 %v1012_v8, 0.0  ;;  %1420 = vrsqrt.f32 %v931_v28 }
 0x427   :  { %v1409_v49 = vpop.eup %1408  ;;  %v990_v62 = vmul.f32 %v2017_v41, %v970_v42  ;;  %v913_v34 = vmul.f32 0.03125, %v869_v11  ;;  %1422 = vrsqrt.f32 %v930_v1 }
 0x428   :  { %1322 = vmatpush3.xpose.msk.msra.mxu1 %vm354_vm4, %v1030_v39  ;;  %v969_v31 = vmul.f32 %v1409_v49, %v1952_v44  ;;  %v1011_v54 = vadd.f32 %v2023_v20, %v991_v47  ;;  %v1411_v48 = vpop.eup %1410 }
 0x429   :  { %1323 = vmatprep.subr.mxu1 %v1451_v22  ;;  %v968_v52 = vmul.f32 %v1411_v48, %v1943_v36  ;;  %v1010_v44 = vadd.f32 %v2023_v20, %v990_v62  ;;  %v929_v12 = vadd.f32 1e-05, %v913_v34  ;;  %v1036_v48 = vrot.slane %v2012_v33, 6 }
 0x42a   :  { %v1027_v15 = vmax.f32 %v1011_v54, 0.0  ;;  %v989_v0 = vmul.f32 %v2017_v41, %v969_v31 }
 0x42b   :  { %v1413_v6 = vpop.eup %1412  ;;  %v1026_v26 = vmax.f32 %v1010_v44, 0.0  ;;  %v988_v9 = vmul.f32 %v2017_v41, %v968_v52  ;;  %1424 = vrsqrt.f32 %v929_v12 }
 0x42c   :  { %1324 = vmatpush3.xpose.msk.msra.mxu1 %vm354_vm4, %v1029_v55  ;;  %v1415_v16 = vpop.eup %1414  ;;  %v967_v60 = vmul.f32 %v1413_v6, %v1964_v58  ;;  %v1009_v36 = vadd.f32 %v2023_v20, %v989_v0  ;;  %1426 = vrsqrt.f32 %v928_v17 }
 0x42d   :  { %1325 = vmatprep.subr.mxu1 %v1451_v22  ;;  %v966_v30 = vmul.f32 %v1415_v16, %v1955_v45  ;;  %v1008_v63 = vadd.f32 %v2023_v20, %v988_v9  ;;  %v1035_v18 = vpop.permute.xlu0 %1034 }
 0x42e   :  { %v1025_v5 = vmax.f32 %v1009_v36, 0.0  ;;  %v987_v58 = vmul.f32 %v2017_v41, %v967_v60 }
 0x42f   :  { %v1417_v27 = vpop.eup %1416  ;;  %v1024_v10 = vmax.f32 %v1008_v63, 0.0  ;;  %v986_v35 = vmul.f32 %v2017_v41, %v966_v30 }
 0x430   :  { %1326 = vmatpush3.xpose.msk.msra.mxu1 %vm354_vm4, %v1028_v61  ;;  %v1419_v19 = vpop.eup %1418  ;;  %v965_v32 = vmul.f32 %v1417_v27, %v1976_v7  ;;  %v1007_v38 = vadd.f32 %v2023_v20, %v987_v58 }
 0x431   :  { %1327 = vmatprep.subr.mxu1 %v1451_v22  ;;  %v964_v14 = vmul.f32 %v1419_v19, %v1967_v50  ;;  %v1006_v43 = vadd.f32 %v2023_v20, %v986_v35 }
 0x432   :  { %v1023_v37 = vmax.f32 %v1007_v38, 0.0  ;;  %v985_v23 = vmul.f32 %v2017_v41, %v965_v32 }
 0x433   :  { %v1421_v45 = vpop.eup %1420  ;;  %v1022_v51 = vmax.f32 %v1006_v43, 0.0  ;;  %v984_v56 = vmul.f32 %v2017_v41, %v964_v14 }
 0x434   :  { %1328 = vmatpush3.xpose.msk.msra.mxu1 %vm354_vm4, %v1027_v15  ;;  %v1423_v7 = vpop.eup %1422  ;;  %v963_v39 = vmul.f32 %v1421_v45, %v1988_v25  ;;  %v1005_v40 = vadd.f32 %v2023_v20, %v985_v23 }
 0x435   :  { %1329 = vmatprep.subr.mxu1 %v1451_v22  ;;  %v962_v13 = vmul.f32 %v1423_v7, %v1979_v4  ;;  %v1004_v42 = vadd.f32 %v2023_v20, %v984_v56 }
 0x436   :  { %v1021_v24 = vmax.f32 %v1005_v40, 0.0  ;;  %v983_v46 = vmul.f32 %v2017_v41, %v963_v39 }
 0x437   :  { %v1020_v8 = vmax.f32 %v1004_v42, 0.0  ;;  %v982_v49 = vmul.f32 %v2017_v41, %v962_v13 }
 0x438   :  { %1330 = vmatpush3.xpose.msk.msra.mxu1 %vm354_vm4, %v1026_v26  ;;  %v1425_v50 = vpop.eup %1424  ;;  %v1003_v47 = vadd.f32 %v2023_v20, %v983_v46 }
 0x439   :  { %1331 = vmatprep.subr.mxu1 %v1451_v22  ;;  %v1427_v25 = vpop.eup %1426  ;;  %v961_v55 = vmul.f32 %v1425_v50, %v2000_v2  ;;  %v1002_v3 = vadd.f32 %v2023_v20, %v982_v49 }
 0x43a   :  { %v960_v4 = vmul.f32 %v1427_v25, %v1991_v59  ;;  %v1019_v21 = vmax.f32 %v1003_v47, 0.0 }
 0x43b   :  { %v981_v31 = vmul.f32 %v2017_v41, %v961_v55  ;;  %v1018_v2 = vmax.f32 %v1002_v3, 0.0 }
 0x43c   :  { %1332 = vmatpush3.xpose.msk.msra.mxu1 %vm354_vm4, %v1025_v5  ;;  %v980_v61 = vmul.f32 %v2017_v41, %v960_v4  ;;  %v1037_v41 = vrot.slane %v1035_v18, 7 }
 0x43d   :  { %1333 = vmatprep.subr.mxu1 %v1451_v22  ;;  %v1001_v29 = vadd.f32 %v2023_v20, %v981_v31 }
 0x43e   :  { %v1000_v59 = vadd.f32 %v2023_v20, %v980_v61 }
 0x43f   :  { %v1017_v54 = vmax.f32 %v1001_v29, 0.0 }
 0x440   :  { %1334 = vmatpush3.xpose.msk.msra.mxu1 %vm354_vm4, %v1024_v10  ;;  %v1016_v62 = vmax.f32 %v1000_v59, 0.0 }
 0x441   :  { %1335 = vmatprep.subr.mxu1 %v1451_v22 }
 0x444   :  { %1336 = vmatpush3.xpose.msk.msra.mxu1 %vm354_vm4, %v1023_v37 }
 0x445   :  { %1337 = vmatprep.subr.mxu1 %v1451_v22 }
 0x448   :  { %1338 = vmatpush3.xpose.msk.msra.mxu1 %vm354_vm4, %v1022_v51 }
 0x449   :  { %1339 = vmatprep.subr.mxu1 %v1451_v22 }
 0x44c   :  { %1340 = vmatpush3.xpose.msk.msra.mxu1 %vm354_vm4, %v1021_v24 }
 0x44d   :  { %1341 = vmatprep.subr.mxu1 %v1451_v22 }
 0x450   :  { %1342 = vmatpush3.xpose.msk.msra.mxu1 %vm354_vm4, %v1020_v8 }
 0x451   :  { %1343 = vmatprep.subr.mxu1 %v1451_v22 }
 0x454   :  { %1344 = vmatpush3.xpose.msk.msra.mxu1 %vm354_vm4, %v1019_v21 }
 0x455   :  { %1345 = vmatprep.subr.mxu1 %v1451_v22 }
 0x458   :  { %1346 = vmatpush3.xpose.msk.msra.mxu1 %vm354_vm4, %v1018_v2 }
 0x459   :  { %1347 = vmatprep.subr.mxu1 %v1451_v22 }
 0x45c   :  { %1348 = vmatpush3.xpose.msk.msra.mxu1 %vm354_vm4, %v1017_v54 }
 0x45d   :  { %1349 = vmatprep.subr.mxu1 %v1451_v22 }
 0x460   :  { %1350 = vmatpush3.xpose.msk.msra.mxu1 %vm354_vm4, %v1016_v62 }
 0x463   :  { %1352 = vmatmul.mubr.msk.f32.vlgmr.msra.gmra.mxu1 %vm354_vm4, %v1036_v48 }
 0x523   :  { %v1155_v28 = vpop.f32.mrf.mxu1 }
 0x524   :  { %v1156_v6 = vadd.f32 %v1155_v28, %v1037_v41 }
 0x525   :  { %v1353_v52 = vpop.f32.mrf.mxu1 }
 0x526   :  { %1159 = vst [vmem:[#allocation2] sm:$0x1] %v1156_v6 }
 0x527   :  { %1440 = shalt.err (!%p1437_p4)
}
 0x528   :  { %1169 = dma.vmem_to_hbm [thread:$0]  %s1167_s16, 16, %s2113_s6, [#allocation3]  }
 0x529   :  { %1449 = dma.done.wait [#allocation3], 16  }
 0x52a   :  { %1450 = vsyncadd [#allocation3], 4294967280 }
 0x52b   :  { %1173 = vsyncpa [#allocation3], 1 }

</bundles_post_ra>
